<compile_context>
chip_gen: v6e
topology: v6e:2x2x1
jax: 0.10.0
libtpu: 0.0.40
codegen_flags: <defaults>
</compile_context>

<pallas_src>
import functools

import jax
import jax.numpy as jnp
from jax import lax
from jax.experimental import pallas as pl
from jax.experimental.pallas import tpu as pltpu


def _vmem_limit(needed_bytes):
    """Explicit scoped-VMEM budget: >= 32 MiB, capped by device VMEM capacity."""
    cap = 96 << 20                      # safe for v5e / v6e (128 MiB physical)
    try:                                # v7x has only 64 MiB per TensorCore
        cap = min(cap, int(pltpu.get_tpu_info().vmem_capacity_bytes) * 3 // 4)
    except Exception:
        pass
    return int(min(max(int(needed_bytes), 32 << 20), cap))


def _pick_rows(H, bytes_per_row, budget=8 << 20):
    """Largest row tile TH (multiple of 8 dividing H) under `budget`, else H."""
    if H * bytes_per_row <= budget:
        return H
    best = None
    th = 8
    while th <= H:
        if H % th == 0 and th * bytes_per_row <= budget:
            best = th
        th += 8
    return best if best is not None else H


# ---------------------------------------------------------------------------
# Stage 1: per-pixel softmax over the class axis (multi-class branch only).
# ---------------------------------------------------------------------------
def _softmax_kernel(pred_ref, prob_ref):
    x = pred_ref[0].astype(jnp.float32)                  # (C, TH, W)
    m = jnp.max(x, axis=0, keepdims=True)                # leading-axis class max
    e = jnp.exp(x - m)
    denom = jnp.sum(e, axis=0, keepdims=True)
    # Exact reciprocal keeps the loss bit-comparable with an f32 reference;
    # approx=True would move the divide onto the otherwise idle EUP slot.
    prob_ref[0] = (e * pl.reciprocal(denom, approx=False)).astype(prob_ref.dtype)


def _softmax_nchw(pred):
    """Softmax over the class axis of (N, C, H, W), tiled over (N, H-tiles)."""
    N, C, H, W = pred.shape
    it = pred.dtype.itemsize
    th = _pick_rows(H, C * W * it)
    nh = H // th
    blk = C * th * W
    needed = 2 * 2 * blk * it + 4 * blk * 4 + (2 << 20)
    return pl.pallas_call(
        _softmax_kernel,
        out_shape=jax.ShapeDtypeStruct((N, C, H, W), pred.dtype),
        grid_spec=pltpu.PrefetchScalarGridSpec(
            num_scalar_prefetch=0,
            grid=(N, nh),
            in_specs=[pl.BlockSpec((1, C, th, W), lambda n, h: (n, 0, h, 0))],
            out_specs=pl.BlockSpec((1, C, th, W), lambda n, h: (n, 0, h, 0)),
        ),
        compiler_params=pltpu.CompilerParams(
            dimension_semantics=("parallel", "parallel"),
            vmem_limit_bytes=_vmem_limit(needed)),
    )(pred)


# ---------------------------------------------------------------------------
# Stage 2: per-(sample, class) boundary BF1.
# ---------------------------------------------------------------------------
def _shift_cols(v, dx):
    """result[:, j] = v[:, j + dx] with zero fill (zero == -inf here, v >= 0)."""
    H, W = v.shape
    z = jnp.zeros((H, abs(dx)), v.dtype)
    if dx > 0:
        return jnp.concatenate([v[:, dx:], z], axis=1)
    return jnp.concatenate([z, v[:, :W + dx]], axis=1)


def _maxpool_same(buf_ref, v, k, pad):
    """k x k, stride-1, 'same' max pool of v (H, W), separable rows/cols.

    Row (sublane) pass goes through the zero-bordered padded scratch buf_ref
    of shape (H + 2*pad, W).  Column (lane) pass is done fully in registers
    with zero-filled lane shifts — no VMEM write-back / re-read.  Zero fill is
    equivalent to PyTorch's -inf max-pool padding because every pooled operand
    is >= 0.
    """
    p = (k - 1) // 2
    H, W = v.shape
    # Rows (H / sublane axis) via the padded scratch.
    buf_ref[pad:pad + H, :] = v
    acc = buf_ref[pad - p:pad - p + H, :]
    for dy in range(-p + 1, p + 1):
        acc = jnp.maximum(acc, buf_ref[pad + dy:pad + dy + H, :])
    # Columns (W / lane axis) in registers.
    out = acc
    for dx in range(1, p + 1):
        out = jnp.maximum(out, _shift_cols(acc, dx))
        out = jnp.maximum(out, _shift_cols(acc, -dx))
    return out


def _boundary_kernel(prob_ref, gt_ref, out_ref, buf_ref, *, n_class, theta0,
                     theta, pad):
    """BF1 for one (sample, class) plane.

    prob_ref: (1, 1, H, W) probabilities (raw logits when n_class == 1)
    gt_ref  : (1, H, W)    int32 labels
    out_ref : (1, 1, 1, 1) f32 BF1 for this (sample, class)
    buf_ref : (H + 2*pad, W) f32 padded pooling scratch
    """
    H, W = prob_ref.shape[2], prob_ref.shape[3]

    # Zero only the two border strips: the interior is fully rewritten by every
    # pool call.  Done unconditionally every grid step — under
    # ("parallel", "parallel") megacore sharding each core must init its own
    # scratch border.
    if pad > 0:
        buf_ref[0:pad, :] = jnp.zeros((pad, W), jnp.float32)
        buf_ref[pad + H:pad + H + pad, :] = jnp.zeros((pad, W), jnp.float32)

    x = prob_ref[0, 0].astype(jnp.float32)               # (H, W)
    if n_class == 1:
        # Binary branch of the reference module: sigmoid + raw gt mask.
        # exp(-x) -> inf for very negative x is safe with the exact reciprocal.
        prob = pl.reciprocal(1.0 + jnp.exp(-x), approx=False)
        one_hot_gt = gt_ref[0].astype(jnp.float32)
    else:
        prob = x                                          # softmax'd in stage 1
        c = pl.program_id(1)
        one_hot_gt = (gt_ref[0] == c).astype(jnp.float32)

    inv_gt = 1.0 - one_hot_gt
    inv_pr = 1.0 - prob

    gt_b = _maxpool_same(buf_ref, inv_gt, theta0, pad) - inv_gt
    pred_b = _maxpool_same(buf_ref, inv_pr, theta0, pad) - inv_pr
    gt_b_ext = _maxpool_same(buf_ref, gt_b, theta, pad)
    pred_b_ext = _maxpool_same(buf_ref, pred_b, theta, pad)

    def _ssum(v):                                         # (H, W) -> (1, 1) f32
        return jnp.sum(v.astype(jnp.float32), axis=(0, 1), keepdims=True)

    eps = 1e-7
    precision = _ssum(pred_b * gt_b_ext) / (_ssum(pred_b) + eps)
    recall = _ssum(pred_b_ext * gt_b) / (_ssum(gt_b) + eps)
    bf1 = 2.0 * precision * recall / (precision + recall + eps)
    out_ref[0, 0] = bf1


def boundary_loss(pred, gt, theta0=3, theta=5):
    """Equivalent of BoundaryLoss(theta0, theta).forward(pred, gt).

    Pass bf16 `pred` on v6e/v7x to halve data movement; spatial sums and the
    precision/recall/BF1 math always accumulate in f32.
    """
    N, C, H, W = pred.shape
    pad = max((theta0 - 1) // 2, (theta - 1) // 2)
    gt = gt.astype(jnp.int32)

    # Stage 1: class softmax (multi-class only; the binary sigmoid is per-plane
    # and fused into stage 2).
    prob = _softmax_nchw(pred) if C > 1 else pred

    plane = H * W
    needed = (2 * plane * (prob.dtype.itemsize + 4)       # double-buffered blocks
              + (H + 2 * pad) * W * 4                     # padded pooling scratch
              + 16 * plane * 4                            # in-kernel temporaries
              + (2 << 20))

    # TODO(synk): for images whose single (H, W) class plane exceeds the VMEM
    # budget, tile H with a (theta0-1)//2 + (theta-1)//2 halo and accumulate the
    # four spatial sums across H-tiles; also fold H into the lane axis when
    # W < 128 for lane-dense vregs.
    bf1 = pl.pallas_call(
        functools.partial(_boundary_kernel, n_class=C, theta0=theta0,
                          theta=theta, pad=pad),
        out_shape=jax.ShapeDtypeStruct((N, C, 1, 1), jnp.float32),
        grid_spec=pltpu.PrefetchScalarGridSpec(
            num_scalar_prefetch=0,
            grid=(N, C),
            in_specs=[
                pl.BlockSpec((1, 1, H, W), lambda n, c: (n, c, 0, 0)),
                pl.BlockSpec((1, H, W), lambda n, c: (n, 0, 0)),
            ],
            out_specs=pl.BlockSpec((1, 1, 1, 1), lambda n, c: (n, c, 0, 0)),
            scratch_shapes=[pltpu.VMEM((H + 2 * pad, W), jnp.float32)],
        ),
        # Per-(sample, class) outputs -> no cross-step accumulator, so both grid
        # axes shard safely across TensorCores (v7x megacore), even for N == 1.
        compiler_params=pltpu.CompilerParams(
            dimension_semantics=("parallel", "parallel"),
            vmem_limit_bytes=_vmem_limit(needed)),
    )(prob, gt)

    return jnp.mean(1.0 - bf1)


# ---------------------------------------------------------------------------
# Pure-JAX reference mirroring the PyTorch module.
# ---------------------------------------------------------------------------
def _reference(pred, gt, theta0=3, theta=5):
    N, C, H, W = pred.shape
    if C == 1:
        prob = jax.nn.sigmoid(pred.astype(jnp.float32))
        one_hot_gt = gt.astype(jnp.float32)[:, None]
    else:
        prob = jax.nn.softmax(pred.astype(jnp.float32), axis=1)
        one_hot_gt = jax.nn.one_hot(gt, C, axis=1, dtype=jnp.float32)

    def maxpool(x, k):
        p = (k - 1) // 2
        return lax.reduce_window(
            x, -jnp.inf, lax.max, (1, 1, k, k), (1, 1, 1, 1),
            [(0, 0), (0, 0), (p, p), (p, p)])

    gt_b = maxpool(1.0 - one_hot_gt, theta0) - (1.0 - one_hot_gt)
    pred_b = maxpool(1.0 - prob, theta0) - (1.0 - prob)
    gt_b_ext = maxpool(gt_b, theta)
    pred_b_ext = maxpool(pred_b, theta)

    gt_b = gt_b.reshape(N, C, -1)
    pred_b = pred_b.reshape(N, C, -1)
    gt_b_ext = gt_b_ext.reshape(N, C, -1)
    pred_b_ext = pred_b_ext.reshape(N, C, -1)

    P = jnp.sum(pred_b * gt_b_ext, axis=2) / (jnp.sum(pred_b, axis=2) + 1e-7)
    R = jnp.sum(pred_b_ext * gt_b, axis=2) / (jnp.sum(gt_b, axis=2) + 1e-7)
    BF1 = 2.0 * P * R / (P + R + 1e-7)
    return jnp.mean(1.0 - BF1)


if __name__ == "__main__":
    key = jax.random.PRNGKey(0)
    k1, k2, k3, k4 = jax.random.split(key, 4)

    # Multi-class (softmax) branch.
    N, C, H, W = 2, 4, 16, 16
    pred = jax.random.normal(k1, (N, C, H, W), dtype=jnp.float32)
    gt = jax.random.randint(k2, (N, H, W), 0, C, dtype=jnp.int32)
    loss = jax.block_until_ready(boundary_loss(pred, gt))
    ref = _reference(pred, gt)
    assert jnp.allclose(loss, ref, atol=1e-5, rtol=1e-5), (loss, ref)

    # Binary (sigmoid) branch.
    pred1 = jax.random.normal(k3, (N, 1, H, W), dtype=jnp.float32)
    gt1 = jax.random.randint(k4, (N, H, W), 0, 2, dtype=jnp.int32)
    loss1 = jax.block_until_ready(boundary_loss(pred1, gt1))
    ref1 = _reference(pred1, gt1)
    assert jnp.allclose(loss1, ref1, atol=1e-5, rtol=1e-5), (loss1, ref1)

    print("KERNEL_OK")
</pallas_src>

<mosaic_0001>
module attributes {stable_mosaic.version = 11 : i64} {
  func.func @_softmax_kernel(%arg0: i32, %arg1: i32, %arg2: memref<1x4x16x16xf32, #tpu.memory_space<vmem>>, %arg3: memref<1x4x16x16xf32, #tpu.memory_space<vmem>>) attributes {dimension_semantics = [#tpu.dimension_semantics<parallel>, #tpu.dimension_semantics<parallel>], iteration_bounds = array<i64: 2, 1>, scalar_prefetch = 0 : i64, scratch_operands = 0 : i64, tpu.core_type = #tpu.core_type<tc>, window_params = [{transform_indices = @transform_0, window_bounds = array<i64: 1, 4, 16, 16>}, {transform_indices = @transform_1, window_bounds = array<i64: 1, 4, 16, 16>}]} {
    %c0 = arith.constant 0 : index
    %c0_0 = arith.constant 0 : index
    %c0_1 = arith.constant 0 : index
    %c0_2 = arith.constant 0 : index
    %0 = vector.load %arg2[%c0, %c0_0, %c0_1, %c0_2] : memref<1x4x16x16xf32, #tpu.memory_space<vmem>>, vector<1x4x16x16xf32>
    %1 = vector.shape_cast %0 : vector<1x4x16x16xf32> to vector<4x16x16xf32>
    %cst = arith.constant dense<0xFF800000> : vector<16x16xf32>
    %2 = vector.multi_reduction <maximumf>, %1, %cst [0] : vector<4x16x16xf32> to vector<16x16xf32>
    %3 = vector.shape_cast %2 : vector<16x16xf32> to vector<1x16x16xf32>
    %4 = vector.broadcast %3 : vector<1x16x16xf32> to vector<4x16x16xf32>
    %5 = arith.subf %1, %4 : vector<4x16x16xf32>
    %6 = math.exp %5 : vector<4x16x16xf32>
    %cst_3 = arith.constant dense<0.000000e+00> : vector<16x16xf32>
    %7 = vector.multi_reduction <add>, %6, %cst_3 [0] : vector<4x16x16xf32> to vector<16x16xf32>
    %8 = vector.shape_cast %7 : vector<16x16xf32> to vector<1x16x16xf32>
    %9 = tpu.reciprocal %8 : vector<1x16x16xf32> -> vector<1x16x16xf32>
    %10 = vector.broadcast %9 : vector<1x16x16xf32> to vector<4x16x16xf32>
    %11 = arith.mulf %6, %10 : vector<4x16x16xf32>
    %c0_4 = arith.constant 0 : index
    %c0_5 = arith.constant 0 : index
    %c0_6 = arith.constant 0 : index
    %c0_7 = arith.constant 0 : index
    %12 = vector.load %arg3[%c0_4, %c0_5, %c0_6, %c0_7] : memref<1x4x16x16xf32, #tpu.memory_space<vmem>>, vector<1x4x16x16xf32>
    %13 = vector.shape_cast %12 : vector<1x4x16x16xf32> to vector<4x16x16xf32>
    %14 = vector.shape_cast %11 : vector<4x16x16xf32> to vector<1x4x16x16xf32>
    tpu.vector_store %arg3[%c0_4, %c0_5, %c0_6, %c0_7], %14 {strides = array<i32>} : memref<1x4x16x16xf32, #tpu.memory_space<vmem>>, vector<1x4x16x16xf32>,
    return
  }
  func.func @transform_0(%arg0: i32, %arg1: i32) -> (i32, i32, i32, i32) {
    %c0_i32 = arith.constant 0 : i32
    %c0_i32_0 = arith.constant 0 : i32
    %c0_i32_1 = arith.constant 0 : i32
    return %arg0, %c0_i32, %arg1, %c0_i32_0 : i32, i32, i32, i32
  }
  func.func @transform_1(%arg0: i32, %arg1: i32) -> (i32, i32, i32, i32) {
    %c0_i32 = arith.constant 0 : i32
    %c0_i32_0 = arith.constant 0 : i32
    %c0_i32_1 = arith.constant 0 : i32
    return %arg0, %c0_i32, %arg1, %c0_i32_0 : i32, i32, i32, i32
  }
}

</mosaic_0001>

<bundles_post_ra>
// kernel: tpu_custom_call.1
= control target key start
LH: loop header
LB: loop body
LE: loop exit
PB: predicated region body
PF: predicated region fallthrough
CT: control target
= control target key end

     0   :  { %6 = vsyncpa [#allocation3], 0  ;;  %s740_s0 = inlined_call_operand.hbm [shape: f32[2,4,16,16], index: 0, kind: input, shape index: {}]   ;;  %s741_s1 = inlined_call_operand.hbm [shape: f32[2,4,16,16], index: 1, kind: output, shape index: {}]  }
   0x1   :  { %8 = vsyncpa [#allocation3 + $0x1], 0 }
   0x2   :  { %9 = vsyncpa [#allocation4], 0 }
   0x3   :  { %11 = vsyncpa [#allocation4 + $0x1], 0  ;;  %s566_s6 = smov 0   ;;  %s568_s7 = smov 0  }
   0x4   :  { %s570_s8 = smov 0   ;;  %s572_s9 = smov 0  }
   0x5   :  { %s574_s10 = smov 0   ;;  %s576_s11 = smov 0  }
   0x6 LB: > { %s337_s12 = sadd.s32 4294967295, %s548_s11   ;;  %s338_s13 = sadd.s32 4294967294, %s548_s11   ;;  %s548_s11 = sphi %s576_s11, %s17_s11   ;;  %s544_s10 = sphi %s574_s10, %s752_s10   ;;  %s540_s9 = sphi %s572_s9, %s751_s9   ;;  %s536_s8 = sphi %s570_s8, %s750_s8   ;;  %s532_s7 = sphi %s568_s7, %s749_s7   ;;  %s528_s6 = sphi %s566_s6, %s748_s6  }
   0x7   : > { %s29_s14 = sadd.s32 1, %s544_s10  ;;  %s38_s15 = sadd.s32 1, %s536_s8 }
   0x8   : > { %p31_p0 = scmp.ge.s32.totalorder %s29_s14, 2  ;;  %p45_p1 = scmp.ne.s32.totalorder %s536_s8, %s532_s7 }
   0x9   : > { %p46_p2 = scmp.eq.s32.totalorder %s548_s11, 0  ;;  %p51_p3 = scmp.ne.s32.totalorder %s532_s7, %s528_s6 }
   0xa   : > { %s754_s14 = smov (%p31_p0, %s29_s14), 0  ;;  %p52_p5 = scmp.eq.s32.totalorder %s337_s12, 0 }
   0xb   : > { %p607_p4 = por %p46_p2, %p45_p1  ;;  %s33_s17 = ssub.s32 %s544_s10, %s754_s14 }
   0xc   : > { %p77_p6 = scmp.eq.s32.totalorder %s337_s12, 1  ;;  %p36_p7 = scmp.eq.s32.totalorder %s33_s17, 0 }
   0xd   : > { %p613_p8 = por %p52_p5, %p51_p3  ;;  %p83_p10 = scmp.eq.s32.totalorder %s338_s13, 1 }
   0xe   : > { %p617_p9 = por %p77_p6, %p45_p1  ;;  %p366_p13 = scmp.lt.s32.totalorder %s548_s11, 2 }
   0xf   : > { %s622_s20 = scalar_select %p36_p7, %s536_s8, %s38_s15  }
  0x10   : > { %p624_p11 = por %p83_p10, %p51_p3  ;;  %s103_s22 = sand.u32 1, %s536_s8  }
  0x11   : > { %s341_s23 = sshll.u32 %s103_s22, 6  ;;  %s352_s24 = sshll.u32 %s544_s10, 10 }
  0x12   : > { %s115_s27 = scalar_lea.hbm %s740_s0, %s352_s24  ;;  %s107_s28 = scalar_lea.vmem [#allocation2], %s341_s23 }
  0x13   : > { %s116_s29 = sshll.u32 %s107_s28, 4  ;;  %p637_p0 = pnand %p366_p13, %p607_p4  ;;  %s117_s29 = int_to_ptr.vmem [resolvable:$true] %s116_s29 }
  0x14   : > { %p344_p1 = scmp.ge.s32.totalorder %s548_s11, 1  ;;  %s104_s2 = scalar_lea.sflag [#allocation3], %s103_s22 }
  0x15   : > { %p442_p2 = pneg %p637_p0  ;;  %s453_s3 = scalar_lea.vmem %s117_s29, 1024 }
  0x16   : > { %p454_p3 = scmp.ne.s32.totalorder %s117_s29, %s453_s3  ;;  %s550_s4 = smov [#allocation2]  }
  0x17   : > { %s458_s5 = sshll.u32 %s550_s4, 4  ;;  %s459_s5 = int_to_ptr.vmem [resolvable:$false] %s458_s5 }
  0x18   : > { %p456_p5 = pnand %p454_p3, %p442_p2  ;;  %s460_s12 = scalar_lea.vmem %s459_s5, 2048 }
  0x19   : > { %p461_p7 = scmp.lt.s32.totalorder %s117_s29, %s459_s5  ;;  %p462_p10 = scmp.lt.s32.totalorder %s460_s12, %s453_s3 }
  0x1a   : > { %p457_p6 = pneg %p456_p5 }
  0x1b   : > { %p463_p12 = por %p462_p10, %p461_p7 }
  0x1d   : > { %p464_p4 = pnand %p463_p12, %p457_p6 }
  0x1f   : > { %467 = shalt.err (!%p464_p4)
}
  0x20   : > { %s551_s13 = smov 128   ;;  %s552_s15 = smov 8  }
  0x21   : > { %361 = dma.hbm_to_vmem [thread:$0]  (!%p637_p0), %s115_s27, 1024, %s117_s29, %s104_s2, %s551_s13, %s551_s13, %s552_s15  }
  0x22   : > { %p124_p13 = scmp.lt.s32.totalorder %s548_s11, 3 }
  0x24   : > { %p125_p2 = pnand %p344_p1, %p124_p13 }
  0x25   : > { %s650_s16 = sand.u32 (!%p125_p2), 1, %s532_s7  }
  0x26   : > { %128 = sbr.rel (%p125_p2) target bundleno = 112 (0x70), region = 24  ;;  %s345_s17 = sshll.u32 (!%p125_p2), %s650_s16, 6 }
  0x27   : > { %s131_s22 = scalar_lea.sflag (!%p125_p2), [#allocation3], %s650_s16  ;;  %s134_s23 = scalar_lea.vmem (!%p125_p2), [#allocation2], %s345_s17 }
  0x2b   : > { %519 = dma.done.wait (%p613_p8), %s131_s22, 1024  }
  0x2c   : > { %521 = vsyncadd (%p613_p8), %s131_s22, 4294966272  ;;  %vm163_vm0 = vcmask 130048   ;;  %v155_v0 = vld [vmem:[%s134_s23] sm:$0xff]  ;;  %v157_v1 = vld [vmem:[%s134_s23 + $0x10] sm:$0xff]  ;;  %s152_s18 = scalar_lea.vmem [#allocation5], %s345_s17  ;;  %s353_s25 = sshll.u32 %s540_s9, 10 }
  0x2d   : > { %v159_v2 = vld [vmem:[%s134_s23 + $0x20] sm:$0xff]  ;;  %v161_v3 = vld [vmem:[%s134_s23 + $0x30] sm:$0xff]  ;;  %v164_v4 = vsel %vm163_vm0, %v155_v0, -inf  ;;  %v165_v5 = vsel %vm163_vm0, %v157_v1, -inf  ;;  %v156_v7 = vld [vmem:[%s134_s23 + $0x8] sm:$0xff]  ;;  %s250_s24 = sshll.u32 %s152_s18, 4  ;;  %s688_s28 = scalar_lea.hbm %s741_s1, %s353_s25  ;;  %s683_s24 = int_to_ptr.vmem [resolvable:$true] %s250_s24 }
  0x2e   : > { %v166_v6 = vsel %vm163_vm0, %v159_v2, -inf  ;;  %v158_v8 = vld [vmem:[%s134_s23 + $0x18] sm:$0xff]  ;;  %v168_v10 = vsel %vm163_vm0, %v161_v3, -inf  ;;  %v160_v11 = vld [vmem:[%s134_s23 + $0x28] sm:$0xff]  ;;  %v171_v13 = vsel %vm163_vm0, %v156_v7, -inf  ;;  %s235_s9 = scalar_lea.sflag [#allocation4], %s650_s16 }
  0x2f   : > { %v167_v9 = vmax.f32 %v164_v4, %v166_v6  ;;  %v162_v12 = vld [vmem:[%s134_s23 + $0x38] sm:$0xff]  ;;  %v172_v14 = vsel %vm163_vm0, %v158_v8, -inf  ;;  %v169_v15 = vmax.f32 %v165_v5, %v168_v10  ;;  %v173_v16 = vsel %vm163_vm0, %v160_v11, -inf  ;;  %s468_s29 = scalar_lea.vmem %s683_s24, 1024  ;;  %s553_s30 = smov [#allocation5]  }
  0x30   : > { %v175_v17 = vsel %vm163_vm0, %v162_v12, -inf  ;;  %v174_v18 = vmax.f32 %v171_v13, %v173_v16  ;;  %p469_p8 = scmp.ne.s32.totalorder %s683_s24, %s468_s29  ;;  %s472_s2 = sshll.u32 %s553_s30, 4  ;;  %s473_s2 = int_to_ptr.vmem [resolvable:$false] %s472_s2 }
  0x31   : > { %v176_v19 = vmax.f32 %v172_v14, %v175_v17  ;;  %v170_v20 = vmax.f32 %v167_v9, %v169_v15  ;;  %s474_s3 = scalar_lea.vmem %s473_s2, 2048  ;;  %p475_p1 = scmp.lt.s32.totalorder %s683_s24, %s473_s2 }
  0x32   : > { %p470_p12 = pnand %p469_p8, %p617_p9  ;;  %p476_p3 = scmp.lt.s32.totalorder %s474_s3, %s468_s29 }
  0x33   : > { %v177_v21 = vmax.f32 %v174_v18, %v176_v19  ;;  %v178_v22 = vsub.f32 %v155_v0, %v170_v20  ;;  %v180_v23 = vsub.f32 %v157_v1, %v170_v20  ;;  %v182_v24 = vsub.f32 %v159_v2, %v170_v20 }
  0x34   : > { %v184_v25 = vsub.f32 %v161_v3, %v170_v20  ;;  %p471_p0 = pneg %p470_p12  ;;  %p477_p5 = por %p476_p3, %p475_p1 }
  0x35   : > { %v179_v26 = vsub.f32 %v156_v7, %v177_v21  ;;  %v181_v27 = vsub.f32 %v158_v8, %v177_v21  ;;  %v186_v28 = vmul.f32 1.442695, %v178_v22  ;;  %v190_v29 = vmul.f32 1.442695, %v180_v23 }
  0x36   : > { %v194_v30 = vmul.f32 1.442695, %v182_v24  ;;  %v183_v31 = vsub.f32 %v160_v11, %v177_v21  ;;  %v198_v32 = vmul.f32 1.442695, %v184_v25  ;;  %v185_v33 = vsub.f32 %v162_v12, %v177_v21  ;;  %p478_p6 = pnand %p477_p5, %p471_p0 }
  0x37   : > { %420 = vpow2.f32 %v186_v28  ;;  %v188_v34 = vmul.f32 1.442695, %v179_v26  ;;  %v192_v35 = vmul.f32 1.442695, %v181_v27 }
  0x38   : > { %422 = vpow2.f32 %v190_v29  ;;  %v196_v36 = vmul.f32 1.442695, %v183_v31  ;;  %v200_v37 = vmul.f32 1.442695, %v185_v33 }
  0x39   : > { %424 = vpow2.f32 %v194_v30 }
  0x3a   : > { %426 = vpow2.f32 %v198_v32 }
  0x3b   : > { %428 = vpow2.f32 %v188_v34 }
  0x3c   : > { %430 = vpow2.f32 %v192_v35 }
  0x3d   : > { %432 = vpow2.f32 %v196_v36 }
  0x3e   : > { %434 = vpow2.f32 %v200_v37 }
  0x44   : > { %v421_v38 = vpop.eup %420 }
  0x45   : > { %v423_v39 = vpop.eup %422  ;;  %v202_v40 = vsel %vm163_vm0, %v421_v38, 0.0 }
  0x46   : > { %v425_v41 = vpop.eup %424  ;;  %v203_v42 = vsel %vm163_vm0, %v423_v39, 0.0 }
  0x47   : > { %v427_v43 = vpop.eup %426  ;;  %v204_v44 = vadd.f32 %v203_v42, %v202_v40  ;;  %v205_v45 = vsel %vm163_vm0, %v425_v41, 0.0 }
  0x48   : > { %v429_v46 = vpop.eup %428  ;;  %v207_v47 = vsel %vm163_vm0, %v427_v43, 0.0 }
  0x49   : > { %v431_v48 = vpop.eup %430  ;;  %v206_v49 = vadd.f32 %v205_v45, %v204_v44  ;;  %v209_v50 = vsel %vm163_vm0, %v429_v46, 0.0 }
  0x4a   : > { %v433_v51 = vpop.eup %432  ;;  %v210_v52 = vsel %vm163_vm0, %v431_v48, 0.0 }
  0x4b   : > { %v435_v53 = vpop.eup %434  ;;  %v208_v54 = vadd.f32 %v207_v47, %v206_v49  ;;  %v211_v55 = vadd.f32 %v210_v52, %v209_v50  ;;  %v212_v56 = vsel %vm163_vm0, %v433_v51, 0.0 }
  0x4c   : > { %v214_v57 = vsel %vm163_vm0, %v435_v53, 0.0 }
  0x4d   : > { %436 = vrcp.f32 %v208_v54  ;;  %v213_v58 = vadd.f32 %v212_v56, %v211_v55 }
  0x4f   : > { %v215_v59 = vadd.f32 %v214_v57, %v213_v58 }
  0x51   : > { %438 = vrcp.f32 %v215_v59 }
  0x5a   : > { %v437_v60 = vpop.eup %436 }
  0x5b   : > { %v218_v61 = vmul.f32 %v437_v60, %v421_v38  ;;  %v220_v62 = vmul.f32 %v437_v60, %v423_v39  ;;  %v222_v63 = vmul.f32 %v437_v60, %v425_v41  ;;  %v224_v0 = vmul.f32 %v437_v60, %v427_v43 }
  0x5d   : > { %226 = vst.msk [vmem:[%s152_s18] sm:$0xff] %vm163_vm0, %v218_v61  ;;  %228 = vst.msk [vmem:[%s152_s18 + $0x10] sm:$0xff] %vm163_vm0, %v220_v62 }
  0x5e   : > { %230 = vst.msk [vmem:[%s152_s18 + $0x20] sm:$0xff] %vm163_vm0, %v222_v63  ;;  %232 = vst.msk [vmem:[%s152_s18 + $0x30] sm:$0xff] %vm163_vm0, %v224_v0  ;;  %v439_v1 = vpop.eup %438 }
  0x5f   : > { %v219_v2 = vmul.f32 %v439_v1, %v429_v46  ;;  %v221_v3 = vmul.f32 %v439_v1, %v431_v48  ;;  %v223_v4 = vmul.f32 %v439_v1, %v433_v51  ;;  %v225_v5 = vmul.f32 %v439_v1, %v435_v53 }
  0x61   : > { %227 = vst.msk [vmem:[%s152_s18 + $0x8] sm:$0xff] %vm163_vm0, %v219_v2  ;;  %229 = vst.msk [vmem:[%s152_s18 + $0x18] sm:$0xff] %vm163_vm0, %v221_v3 }
  0x62   : > { %231 = vst.msk [vmem:[%s152_s18 + $0x28] sm:$0xff] %vm163_vm0, %v223_v4  ;;  %233 = vst.msk [vmem:[%s152_s18 + $0x38] sm:$0xff] %vm163_vm0, %v225_v5 }
  0x63   : > { %481 = shalt.err (!%p478_p6)
}
  0x64   : > { %s482_s4 = scalar_lea.hbm %s688_s28, 1024  ;;  %s486_s13 = scalar_lea.hbm %s741_s1, 2048 }
  0x65   : > { %p483_p7 = scmp.ne.s32.totalorder %s688_s28, %s482_s4  ;;  %p487_p13 = scmp.lt.s32.totalorder %s688_s28, %s741_s1 }
  0x66   : > { %p488_p2 = scmp.lt.s32.totalorder %s486_s13, %s482_s4 }
  0x67   : > { %p484_p10 = pnand %p483_p7, %p617_p9 }
  0x68   : > { %p489_p8 = por %p488_p2, %p487_p13 }
  0x69   : > { %p485_p4 = pneg %p484_p10 }
  0x6b   : > { %p490_p12 = pnand %p489_p8, %p485_p4 }
  0x6d   : > { %493 = shalt.err (!%p490_p12)
}
  0x6e   : > { %s554_s22 = smov 128   ;;  %s555_s23 = smov 8  }
  0x6f   : > { %356 = dma.vmem_to_hbm [thread:$0]  (%p617_p9), %s683_s24, 1024, %s688_s28, %s235_s9, %s554_s22, %s554_s22, %s555_s23  }
  0x70 PF: > { %s265_s18 = sand.u32 1, %s528_s6   ;;  %p747_p0 = scmp.ge.s32.totalorder %s548_s11, 2 }
  0x71   : > { %s266_s25 = scalar_lea.sflag [#allocation4], %s265_s18 }
  0x72   : > { %p363_p1 = pnand %p747_p0, %p624_p11 }
  0x74   : > { %p364_p3 = pneg %p363_p1 }
  0x76   : > { %523 = dma.done.wait (%p364_p3), %s266_s25, 1024  }
  0x77   : > { %525 = vsyncadd (%p364_p3), %s266_s25, 4294966272  ;;  %s17_s11 = sadd.s32 1, %s548_s11   ;;  %s748_s6 = smov %s532_s7 }
  0x78   : > { %p14_p5 = scmp.ge.s32.totalorder %s17_s11, 4   ;;  %s749_s7 = smov %s536_s8 }
  0x79   : > { %s750_s8 = smov %s622_s20  ;;  %s751_s9 = smov %s544_s10 }
  0x7a   : > { %s752_s10 = smov %s754_s14  ;;  %16 = sbr.rel (!%p14_p5) target bundleno = 6 (0x6), region = 69 }
  0x7f   :  { %271 = vsyncpa [#allocation3], 1 }
  0x80   :  { %273 = vsyncpa [#allocation3 + $0x1], 1 }
  0x81   :  { %274 = vsyncpa [#allocation4], 1 }
  0x82   :  { %276 = vsyncpa [#allocation4 + $0x1], 1 }

</bundles_post_ra>
